<compile_context>
chip_gen: v7x
topology: tpu7x:2x2x1
jax: 0.10.0
libtpu: 0.0.40
codegen_flags: <defaults>
</compile_context>

<pallas_src>
import jax
import jax.numpy as jnp
from jax.experimental import pallas as pl
from jax.experimental.pallas import tpu as pltpu

GRANULARITY = 24.0 * 30.0 * 6.0  # matches the reference: 24 * 30 * 6


def _make_kernel():
    inv_g = 1.0 / GRANULARITY  # Python float -> inlined literal (no captured const)

    def kernel(pooled_ref, w_ref, wt_ref, cand_ref, tgt_ref, out_ref):
        # --- encoder matmul on the MXU, f32 accumulation ---
        seq_emb = jnp.dot(pooled_ref[...], w_ref[...],
                          preferred_element_type=jnp.float32)        # (Bt, D) f32

        # --- candidate scoring: VPU broadcast-multiply + reduce over D ---
        # (replaces b_tile tiny M=1 MXU matmuls; K1 is small so VPU+XLU wins)
        cand = cand_ref[...].astype(jnp.float32)                      # (Bt, K1, D)
        s = jnp.sum(seq_emb[:, None, :] * cand, axis=-1)              # (Bt, K1) f32

        # --- cross-entropy, target class = 0 (positive is column 0), f32 ---
        m = jnp.max(s, axis=-1, keepdims=True)                        # (Bt, 1)
        lse = m + jnp.log(jnp.sum(jnp.exp(s - m), axis=-1, keepdims=True))
        ce = lse - s[:, 0:1]                                          # (Bt, 1)

        # --- time head as a VPU dot: pred = seq_emb . w_time (no MXU padding) ---
        pred = jnp.sum(seq_emb * wt_ref[...], axis=-1, keepdims=True)  # (Bt, 1)

        # --- scaled time-MSE contribution:  ((pred - tgt)/g)^2 / 5 ---
        diff = (pred - tgt_ref[...]) * inv_g                          # (Bt, 1)
        out_ref[...] = ce + diff * diff * 0.2                         # (Bt, 1)

    return kernel


def random_ce_and_time_loss(item_emb, w_enc, w_time, item_seq, item_seq_len,
                            target_id, time_seq, time_interval_seq,
                            target_time, K, sample_key, *, b_tile=None):
    # TODO(synk): the real p_model also consumes time_interval_seq inside its
    # encoder; the synthetic encoder here ignores it.
    B, L = item_seq.shape
    n_items, D = item_emb.shape
    K1 = K + 1

    # --- negative sampling: uniform over non-target items, O(B*K). ---
    # TODO(synk): the reference multinomial samples WITHOUT replacement; this
    # shift-past-target draw is with replacement among the K negatives
    # (negligible difference for K << n_items).
    r = jax.random.randint(sample_key, (B, K), 0, n_items - 1, dtype=jnp.int32)
    neg_items = r + (r >= target_id[:, None].astype(jnp.int32)).astype(jnp.int32)
    pos_neg_items = jnp.concatenate(
        [target_id[:, None].astype(jnp.int32), neg_items], axis=1)    # (B, K1)

    # --- glue: bf16 table ONCE, then both gathers (halves HBM traffic) ---
    # TODO(synk): if n_items*D*2B fits VMEM, gather candidates in-kernel via
    # scalar-prefetched indices instead of materializing cand_emb in HBM.
    item_emb_bf = item_emb.astype(jnp.bfloat16)
    cand_emb = item_emb_bf[pos_neg_items]                              # (B, K1, D) bf16

    seq_len = jnp.maximum(item_seq_len, 1)                 # guard empty sequences
    valid = (jnp.arange(L)[None, :] < seq_len[:, None]).astype(jnp.bfloat16)
    pooled = jnp.einsum('bl,bld->bd', valid, item_emb_bf[item_seq],
                        preferred_element_type=jnp.float32)            # (B, D) f32
    pooled = (pooled / seq_len[:, None].astype(jnp.float32)).astype(jnp.bfloat16)

    # --- target interval: target_time - time_seq[b, len-1] ---
    last_time = jnp.take_along_axis(
        time_seq, (seq_len - 1)[:, None].astype(jnp.int32), axis=1)
    target_interval = (target_time[:, None] - last_time).astype(jnp.float32)

    w_enc_bf = w_enc.astype(jnp.bfloat16)                              # (D, D)
    w_time_row = w_time.reshape(1, D).astype(jnp.float32)              # (1, D)

    # --- batch tile: VMEM budget (double-buffered bf16 cand dominates),
    #     multiple of 8, capped at 256 (full MXU M-dim on v6e/v7x), clamped
    #     to the padded batch so tiny batches don't pad to 256 rows. ---
    if b_tile is None:
        budget = 24 * 1024 * 1024
        per_row = 2 * K1 * D * 2                 # double-buffered cand bytes/row
        bt = max(8, min(256, budget // max(per_row, 1)))
        bt = min(bt, -(-B // 8) * 8)
        b_tile = int((bt // 8) * 8)

    num_tiles = -(-B // b_tile)
    b_pad = num_tiles * b_tile
    pad_b = b_pad - B
    pooled_p = jnp.pad(pooled, ((0, pad_b), (0, 0)))
    cand_p = jnp.pad(cand_emb, ((0, pad_b), (0, 0), (0, 0)))
    tgt_p = jnp.pad(target_interval, ((0, pad_b), (0, 0)))

    flops = 2 * b_pad * D * D + 2 * b_pad * K1 * D + 2 * b_pad * D
    transcendentals = b_pad * (K1 + 1)
    bytes_accessed = (pooled_p.size * 2 + cand_p.size * 2 + w_enc_bf.size * 2
                      + w_time_row.size * 4 + tgt_p.size * 4 + b_pad * 4)

    per_row = pl.pallas_call(
        _make_kernel(),
        out_shape=jax.ShapeDtypeStruct((b_pad, 1), jnp.float32),
        grid=(num_tiles,),
        in_specs=[
            pl.BlockSpec((b_tile, D), lambda i: (i, 0)),          # pooled (bf16)
            pl.BlockSpec((D, D), lambda i: (0, 0)),               # W_enc (bf16)
            pl.BlockSpec((1, D), lambda i: (0, 0)),               # w_time row (f32)
            pl.BlockSpec((b_tile, K1, D), lambda i: (i, 0, 0)),   # candidates (bf16)
            pl.BlockSpec((b_tile, 1), lambda i: (i, 0)),          # target interval
        ],
        out_specs=pl.BlockSpec((b_tile, 1), lambda i: (i, 0)),
        compiler_params=pltpu.CompilerParams(
            dimension_semantics=("parallel",),
            vmem_limit_bytes=48 * 1024 * 1024),   # safe on v7x's 64 MiB physical
        cost_estimate=pl.CostEstimate(flops=flops,
                                      transcendentals=transcendentals,
                                      bytes_accessed=bytes_accessed),
    )(pooled_p, w_enc_bf, w_time_row, cand_p, tgt_p)

    # drop padded rows; loss = mean(ce_b + (diff_b/g)^2 / 5) = type_loss + time_loss
    per_row = per_row.reshape(b_pad)[:B]
    return jnp.mean(per_row)


if __name__ == "__main__":
    B, L, D, N_ITEMS, K = 2, 8, 32, 64, 8

    key = jax.random.PRNGKey(0)
    k1, k2, k3, k4, k5, k6, k7, k8 = jax.random.split(key, 8)

    # deterministic synthetic "p_model" parameters
    item_emb = 0.1 * jax.random.normal(k1, (N_ITEMS, D), jnp.float32)
    w_enc = 0.1 * jax.random.normal(k2, (D, D), jnp.float32)
    w_time = 0.1 * jax.random.normal(k3, (D, 1), jnp.float32)

    # deterministic synthetic batch
    item_seq = jax.random.randint(k4, (B, L), 0, N_ITEMS, jnp.int32)
    item_seq_len = jnp.array([L, L // 2], jnp.int32)
    target_id = jax.random.randint(k5, (B,), 0, N_ITEMS, jnp.int32)
    time_seq = jnp.cumsum(
        jax.random.uniform(k6, (B, L), jnp.float32, 1.0, 24.0), axis=1)
    time_interval_seq = jnp.diff(time_seq, axis=1,
                                 prepend=jnp.zeros((B, 1), jnp.float32))
    target_time = time_seq[:, -1] + jax.random.uniform(
        k7, (B,), jnp.float32, 1.0, 48.0)

    loss = random_ce_and_time_loss(item_emb, w_enc, w_time, item_seq,
                                   item_seq_len, target_id, time_seq,
                                   time_interval_seq, target_time, K, k8)
    jax.block_until_ready(loss)
    print("KERNEL_OK")
</pallas_src>

<mosaic_0001>
module attributes {stable_mosaic.version = 11 : i64} {
  func.func @kernel(%arg0: i32, %arg1: memref<8x32xbf16, #tpu.memory_space<vmem>>, %arg2: memref<32x32xbf16, #tpu.memory_space<vmem>>, %arg3: memref<1x32xf32, #tpu.memory_space<vmem>>, %arg4: memref<8x9x32xbf16, #tpu.memory_space<vmem>>, %arg5: memref<8x1xf32, #tpu.memory_space<vmem>>, %arg6: memref<8x1xf32, #tpu.memory_space<vmem>>) attributes {dimension_semantics = [#tpu.dimension_semantics<parallel>], iteration_bounds = array<i64: 1>, scalar_prefetch = 0 : i64, scratch_operands = 0 : i64, tpu.core_type = #tpu.core_type<tc>, window_params = [{transform_indices = @transform_0, window_bounds = array<i64: 8, 32>}, {pipeline_mode = #tpu.pipeline_mode<synchronous>, transform_indices = @transform_1, window_bounds = array<i64: 32, 32>}, {pipeline_mode = #tpu.pipeline_mode<synchronous>, transform_indices = @transform_2, window_bounds = array<i64: 1, 32>}, {transform_indices = @transform_3, window_bounds = array<i64: 8, 9, 32>}, {transform_indices = @transform_4, window_bounds = array<i64: 8, 1>}, {transform_indices = @transform_5, window_bounds = array<i64: 8, 1>}]} {
    %c0 = arith.constant 0 : index
    %c0_0 = arith.constant 0 : index
    %0 = vector.load %arg1[%c0, %c0_0] : memref<8x32xbf16, #tpu.memory_space<vmem>>, vector<8x32xbf16>
    %c0_1 = arith.constant 0 : index
    %c0_2 = arith.constant 0 : index
    %1 = vector.load %arg2[%c0_1, %c0_2] : memref<32x32xbf16, #tpu.memory_space<vmem>>, vector<32x32xbf16>
    %cst = arith.constant dense<0.000000e+00> : vector<8x32xf32>
    %2 = tpu.matmul %0, %1, %cst {dimension_numbers = #tpu.dot_dimension_numbers<[1], [0], [0], [1], [0, 0, 1, 1], [], []>} : vector<8x32xbf16>, vector<32x32xbf16>, vector<8x32xf32> -> vector<8x32xf32>
    %c0_3 = arith.constant 0 : index
    %c0_4 = arith.constant 0 : index
    %c0_5 = arith.constant 0 : index
    %3 = vector.load %arg4[%c0_3, %c0_4, %c0_5] : memref<8x9x32xbf16, #tpu.memory_space<vmem>>, vector<8x9x32xbf16>
    %4 = arith.extf %3 : vector<8x9x32xbf16> to vector<8x9x32xf32>
    %5 = vector.shape_cast %2 : vector<8x32xf32> to vector<8x1x32xf32>
    %6 = vector.broadcast %5 : vector<8x1x32xf32> to vector<8x9x32xf32>
    %7 = arith.mulf %6, %4 : vector<8x9x32xf32>
    %cst_6 = arith.constant dense<0.000000e+00> : vector<8x9xf32>
    %8 = vector.multi_reduction <add>, %7, %cst_6 [2] : vector<8x9x32xf32> to vector<8x9xf32>
    %cst_7 = arith.constant dense<0xFF800000> : vector<8xf32>
    %9 = vector.multi_reduction <maximumf>, %8, %cst_7 [1] : vector<8x9xf32> to vector<8xf32>
    %10 = vector.shape_cast %9 : vector<8xf32> to vector<8x1xf32>
    %11 = vector.broadcast %10 : vector<8x1xf32> to vector<8x9xf32>
    %12 = arith.subf %8, %11 : vector<8x9xf32>
    %13 = math.exp %12 : vector<8x9xf32>
    %cst_8 = arith.constant dense<0.000000e+00> : vector<8xf32>
    %14 = vector.multi_reduction <add>, %13, %cst_8 [1] : vector<8x9xf32> to vector<8xf32>
    %15 = vector.shape_cast %14 : vector<8xf32> to vector<8x1xf32>
    %16 = math.log %15 : vector<8x1xf32>
    %17 = arith.addf %10, %16 : vector<8x1xf32>
    %18 = vector.extract_strided_slice %8 {offsets = [0, 0], sizes = [8, 1], strides = [1, 1]} : vector<8x9xf32> to vector<8x1xf32>
    %19 = arith.subf %17, %18 : vector<8x1xf32>
    %c0_9 = arith.constant 0 : index
    %c0_10 = arith.constant 0 : index
    %20 = vector.load %arg3[%c0_9, %c0_10] : memref<1x32xf32, #tpu.memory_space<vmem>>, vector<1x32xf32>
    %21 = vector.broadcast %20 : vector<1x32xf32> to vector<8x32xf32>
    %22 = arith.mulf %2, %21 : vector<8x32xf32>
    %cst_11 = arith.constant dense<0.000000e+00> : vector<8xf32>
    %23 = vector.multi_reduction <add>, %22, %cst_11 [1] : vector<8x32xf32> to vector<8xf32>
    %24 = vector.shape_cast %23 : vector<8xf32> to vector<8x1xf32>
    %c0_12 = arith.constant 0 : index
    %c0_13 = arith.constant 0 : index
    %25 = vector.load %arg5[%c0_12, %c0_13] : memref<8x1xf32, #tpu.memory_space<vmem>>, vector<8x1xf32>
    %26 = arith.subf %24, %25 : vector<8x1xf32>
    %cst_14 = arith.constant 2.31481477E-4 : f32
    %27 = vector.broadcast %cst_14 : f32 to vector<8x1xf32>
    %28 = arith.mulf %26, %27 : vector<8x1xf32>
    %29 = arith.mulf %28, %28 : vector<8x1xf32>
    %cst_15 = arith.constant 2.000000e-01 : f32
    %30 = vector.broadcast %cst_15 : f32 to vector<8x1xf32>
    %31 = arith.mulf %29, %30 : vector<8x1xf32>
    %32 = arith.addf %19, %31 : vector<8x1xf32>
    %c0_16 = arith.constant 0 : index
    %c0_17 = arith.constant 0 : index
    %33 = vector.load %arg6[%c0_16, %c0_17] : memref<8x1xf32, #tpu.memory_space<vmem>>, vector<8x1xf32>
    tpu.vector_store %arg6[%c0_16, %c0_17], %32 {strides = array<i32>} : memref<8x1xf32, #tpu.memory_space<vmem>>, vector<8x1xf32>,
    return
  }
  func.func @transform_0(%arg0: i32) -> (i32, i32) {
    %c0_i32 = arith.constant 0 : i32
    %c0_i32_0 = arith.constant 0 : i32
    return %arg0, %c0_i32 : i32, i32
  }
  func.func @transform_1(%arg0: i32) -> (i32, i32) {
    %c0_i32 = arith.constant 0 : i32
    %c0_i32_0 = arith.constant 0 : i32
    %c0_i32_1 = arith.constant 0 : i32
    return %c0_i32, %c0_i32_0 : i32, i32
  }
  func.func @transform_2(%arg0: i32) -> (i32, i32) {
    %c0_i32 = arith.constant 0 : i32
    %c0_i32_0 = arith.constant 0 : i32
    %c0_i32_1 = arith.constant 0 : i32
    return %c0_i32, %c0_i32_0 : i32, i32
  }
  func.func @transform_3(%arg0: i32) -> (i32, i32, i32) {
    %c0_i32 = arith.constant 0 : i32
    %c0_i32_0 = arith.constant 0 : i32
    %c0_i32_1 = arith.constant 0 : i32
    return %arg0, %c0_i32, %c0_i32_0 : i32, i32, i32
  }
  func.func @transform_4(%arg0: i32) -> (i32, i32) {
    %c0_i32 = arith.constant 0 : i32
    %c0_i32_0 = arith.constant 0 : i32
    return %arg0, %c0_i32 : i32, i32
  }
  func.func @transform_5(%arg0: i32) -> (i32, i32) {
    %c0_i32 = arith.constant 0 : i32
    %c0_i32_0 = arith.constant 0 : i32
    return %arg0, %c0_i32 : i32, i32
  }
}

</mosaic_0001>

<bundles_post_ra>
// kernel: tpu_custom_call.1
= control target key start
LH: loop header
LB: loop body
LE: loop exit
PB: predicated region body
PF: predicated region fallthrough
CT: control target
= control target key end

     0   :  { %v715_v0 = vmov 0.0   ;;  %vm716_vm0 = vmmov 0   ;;  %vm38_vm1 = vcmask 261120   ;;  %v717_v4 = vmov 1966171168   ;;  %s1023_s1 = inlined_call_operand.vmem [shape: bf16[32,32], index: 1, kind: input, shape index: {}]   ;;  %s1024_s0 = inlined_call_operand.vmem [shape: bf16[8,32], index: 0, kind: input, shape index: {}]   ;;  %s1025_s3 = inlined_call_operand.vmem [shape: bf16[8,9,32], index: 3, kind: input, shape index: {}]   ;;  %s1026_s2 = inlined_call_operand.vmem [shape: f32[1,32], index: 2, kind: input, shape index: {}]   ;;  %s1027_s4 = inlined_call_operand.vmem [shape: f32[8,1], index: 4, kind: input, shape index: {}]   ;;  %s1028_s5 = inlined_call_operand.vmem [shape: f32[8,1], index: 5, kind: output, shape index: {}]  }
   0x1   :  { %665 = vmatprep.subr.bf16.mxu0 %v715_v0  ;;  %v679_v1 = vld [vmem:[%s1023_s1] sm:$0xff]   ;;  %669 = vmatprep.mubr.msk.bf16.mxu0 %vm716_vm0, %v715_v0  ;;  %v680_v2 = vld [vmem:[%s1023_s1 + $0x8] sm:$0xff]   ;;  %v117_v5 = vunpack.c.l.s4 %v717_v4  ;;  %v119_v6 = vlaneseq  ;;  %v87_v34 = vld [vmem:[%s1025_s3 + $0x14] sm:$0x1]  ;;  %vm223_vm2 = vcmask 253952   ;;  %vm296_vm3 = vcmask 130112  }
   0x2   :  { %666 = vmatpush3.bf16.msra.mxu0 %v679_v1  ;;  %v21_v3 = vld [vmem:[%s1024_s0] sm:$0xf]  ;;  %v83_v16 = vld [vmem:[%s1025_s3 + $0x4] sm:$0x1]  ;;  %v85_v24 = vld [vmem:[%s1025_s3 + $0xc] sm:$0x1]  ;;  %v103_v42 = vunpack.c.l.bf16 %v87_v34 }
   0x3   :  { %667 = vmatprep.subr.bf16.mxu0 %v715_v0  ;;  %v118_v7 = vunpack.c.0.s8 %v117_v5  ;;  %v760_v8 = vshrl.u32 %v119_v6, 7  ;;  %v82_v11 = vld [vmem:[%s1025_s3] ss:$8 sps:$4 sm:$0xff]   ;;  %v99_v23 = vunpack.c.l.bf16 %v83_v16  ;;  %v101_v32 = vunpack.c.l.bf16 %v85_v24  ;;  %v91_v45 = vld [vmem:[%s1025_s3 + $0x24] sm:$0x1] }
   0x4   :  { %v98_v21 = vunpack.c.l.bf16 %v82_v11  ;;  %v100_v26 = vunpack.c.h.bf16 %v82_v11  ;;  %v86_v28 = vld [vmem:[%s1025_s3 + $0x10] ss:$16 sps:$4 sm:$0xff]   ;;  %v88_v49 = vld [vmem:[%s1025_s3 + $0x18] ss:$16 sps:$4 sm:$0xff]   ;;  %v107_v53 = vunpack.c.l.bf16 %v91_v45  ;;  %v89_v55 = vld [vmem:[%s1025_s3 + $0x1c] sm:$0x1] }
   0x5   :  { %v121_v9 = vsub.s32 %v118_v7, %v760_v8  ;;  %v772_v15 = vsub.s32 0, %v760_v8  ;;  %v102_v33 = vunpack.c.l.bf16 %v86_v28  ;;  %v106_v44 = vunpack.c.h.bf16 %v86_v28  ;;  %v93_v0 = vld [vmem:[%s1025_s3 + $0x2c] sm:$0x1]  ;;  %v94_v4 = vld [vmem:[%s1025_s3 + $0x30] ss:$8 sps:$4 sm:$0xff]  }
   0x6   :  { %668 = vmatpush3.bf16.msra.mxu0 %v680_v2  ;;  %v104_v54 = vunpack.c.l.bf16 %v88_v49  ;;  %v105_v62 = vunpack.c.l.bf16 %v89_v55  ;;  %v108_v63 = vunpack.c.h.bf16 %v88_v49  ;;  %v109_v11 = vunpack.c.l.bf16 %v93_v0 }
   0x7   :  { %vm361_vm4 = vcmask 1041409   ;;  %vm363_vm5 = vcmask 1042434   ;;  %vm365_vm6 = vcmask 1043459   ;;  %vm367_vm7 = vcmask 1044484  }
   0x8   :  { %vm369_vm8 = vcmask 1045509   ;;  %vm371_vm9 = vcmask 1046534   ;;  %vm376_vm10 = vcmask 72704   ;;  %vm373_vm11 = vcmask 1047559  }
   0x9   :  { %670 = vmatmul.mubr.msk.bf16.vlgmr.msra.gmra.mrb[0].mxu0 %vm38_vm1, %v21_v3  ;;  %vm652_vm12 = vcmask 7168  }
  0xdc   :  { %v763_v10 = vpop.f32.mrb[0].mxu0 }
  0xdd   :  { %v115_v12 = vcombine.high %v763_v10, %v763_v10  ;;  %v122_v13 = vrot.slane %v763_v10, %v121_v9  ;;  %v671_v14 = vpop.f32.mrb[1].mxu0 }
  0xde   :  { %v79_v17 = vpop.f32.mrb[2].mxu0 }
  0xdf   :  { %v130_v18 = vcombine.high %v122_v13, %v122_v13  ;;  %v138_v19 = vrot.slane %v122_v13, %v121_v9  ;;  %v672_v20 = vpop.f32.mrb[3].mxu0  ;;  %v129_v22 = vrot.slane %v115_v12, %v121_v9  ;;  %v110_v12 = vunpack.c.l.bf16 %v94_v4  ;;  %v95_v13 = vld [vmem:[%s1025_s3 + $0x34] sm:$0x1] }
  0xe1   :  { %v167_v25 = vrot.slane %v138_v19, %v772_v15  ;;  %v152_v27 = vrot.slane %v130_v18, %v121_v9  ;;  %v160_v29 = vcombine.high %v138_v19, %v138_v19  ;;  %v145_v35 = vrot.slane %v129_v22, %v121_v9 }
  0xe2   :  { %v131_v43 = vcombine.high %v129_v22, %v129_v22  ;;  %v97_v22 = vld [vmem:[%s1025_s3 + $0x3c] sm:$0x1] }
  0xe3   :  { %v204_v30 = vmul.f32 %v167_v25, %v98_v21  ;;  %v171_v31 = vrot.slane %v152_v27, %v772_v15  ;;  %v205_v38 = vmul.f32 %v167_v25, %v99_v23  ;;  %v175_v39 = vrot.slane %v160_v29, %v772_v15 }
  0xe4   :  { %v183_v48 = vrot.slane %v145_v35, %v772_v15  ;;  %v162_v50 = vcombine.high %v152_v27, %v152_v27  ;;  %v159_v59 = vrot.slane %v131_v43, %v121_v9  ;;  %v161_v5 = vcombine.high %v145_v35, %v145_v35 }
  0xe5   :  { %v220_v36 = vsel %vm38_vm1, %v204_v30, 0.0  ;;  %v206_v37 = vmul.f32 %v171_v31, %v100_v26  ;;  %v207_v41 = vmul.f32 %v171_v31, %v101_v32  ;;  %v224_v46 = vsel %vm223_vm2, %v205_v38, 0.0 }
  0xe6   :  { %221 = vadd.xlane.f32.xlu0 %v220_v36  ;;  %v208_v47 = vmul.f32 %v175_v39, %v102_v33  ;;  %v209_v52 = vmul.f32 %v175_v39, %v103_v42  ;;  %v212_v57 = vmul.f32 %v183_v48, %v106_v44  ;;  %v179_v58 = vrot.slane %v162_v50, %v772_v15 }
  0xe7   :  { %v227_v40 = vsel %vm38_vm1, %v206_v37, 0.0  ;;  %v230_v51 = vsel %vm223_vm2, %v207_v41, 0.0  ;;  %v213_v61 = vmul.f32 %v183_v48, %v107_v53  ;;  %v187_v3 = vrot.slane %v159_v59, %v772_v15 }
  0xe8   :  { %228 = vadd.xlane.f32.xlu1 %v227_v40  ;;  %v233_v56 = vsel %vm38_vm1, %v208_v47, 0.0  ;;  %v236_v60 = vsel %vm223_vm2, %v209_v52, 0.0  ;;  %v245_v1 = vsel %vm38_vm1, %v212_v57, 0.0  ;;  %v210_v2 = vmul.f32 %v179_v58, %v104_v54 }
  0xe9   :  { %v248_v7 = vsel %vm223_vm2, %v213_v61, 0.0  ;;  %v211_v9 = vmul.f32 %v179_v58, %v105_v62  ;;  %v214_v16 = vmul.f32 %v187_v3, %v108_v63  ;;  %v191_v17 = vrot.slane %v161_v5, %v772_v15 }
  0xea   :  { %225 = vadd.xlane.f32.xlu0 %v224_v46  ;;  %v239_v14 = vsel %vm38_vm1, %v210_v2, 0.0  ;;  %v163_v18 = vcombine.high %v159_v59, %v159_v59  ;;  %v215_v20 = vmul.f32 %v187_v3, %v109_v11  ;;  %v111_v21 = vunpack.c.l.bf16 %v95_v13 }
  0xeb   :  { %v242_v19 = vsel %vm223_vm2, %v211_v9, 0.0  ;;  %v251_v23 = vsel %vm38_vm1, %v214_v16, 0.0  ;;  %v216_v24 = vmul.f32 %v191_v17, %v110_v12  ;;  %v112_v25 = vunpack.c.h.bf16 %v94_v4 }
  0xec   :  { %231 = vadd.xlane.f32.xlu1 %v230_v51  ;;  %v195_v26 = vrot.slane %v163_v18, %v772_v15  ;;  %v254_v27 = vsel %vm223_vm2, %v215_v20, 0.0  ;;  %v217_v28 = vmul.f32 %v191_v17, %v111_v21  ;;  %v113_v29 = vunpack.c.l.bf16 %v97_v22 }
  0xed   :  { %v257_v30 = vsel %vm38_vm1, %v216_v24, 0.0  ;;  %v286_v42 = vand.u32 127, %v119_v6 }
  0xee   :  { %234 = vadd.xlane.f32.xlu0 %v233_v56  ;;  %v218_v31 = vmul.f32 %v195_v26, %v112_v25  ;;  %v260_v32 = vsel %vm223_vm2, %v217_v28, 0.0  ;;  %v219_v33 = vmul.f32 %v195_v26, %v113_v29  ;;  %v387_v28 = vsub.s32 1, %v760_v8 }
  0xef   :  { %v291_v44 = vadd.s32 4294967288, %v286_v42  ;;  %v856_v49 = vsub.s32 %v286_v42, %v760_v8  ;;  %v403_v29 = vsub.s32 5, %v760_v8 }
  0xf0   :  { %237 = vadd.xlane.f32.xlu1 %v236_v60  ;;  %v263_v34 = vsel %vm38_vm1, %v218_v31, 0.0  ;;  %v266_v35 = vsel %vm223_vm2, %v219_v33, 0.0 }
  0xf1   :  { %v851_v47 = vsub.s32 %v291_v44, %v760_v8 }
  0xf2   :  { %246 = vadd.xlane.f32.xlu0 %v245_v1 }
  0xf4   :  { %249 = vadd.xlane.f32.xlu1 %v248_v7 }
  0xf6   :  { %240 = vadd.xlane.f32.xlu0 %v239_v14 }
  0xf8   :  { %243 = vadd.xlane.f32.xlu1 %v242_v19 }
  0xfa   :  { %252 = vadd.xlane.f32.xlu0 %v251_v23 }
  0xfc   :  { %255 = vadd.xlane.f32.xlu1 %v254_v27  ;;  %v718_v27 = vmov 0  }
  0xfd   :  { %678 = vset.pattern.permute.xlu0 %v718_v27  ;;  %677 = vset.pattern.permute.xlu1 %v718_v27 }
  0xfe   :  { %258 = vadd.xlane.f32.xlu0 %v257_v30  ;;  %v407_v30 = vsub.s32 6, %v760_v8 }
 0x100   :  { %261 = vadd.xlane.f32.xlu1 %v260_v32 }
 0x102   :  { %264 = vadd.xlane.f32.xlu0 %v263_v34 }
 0x104   :  { %267 = vadd.xlane.f32.xlu1 %v266_v35  ;;  %v411_v35 = vsub.s32 7, %v760_v8 }
 0x173   :  { %v831_v36 = vpop.xlane.xlu0 %221 }
 0x174   :  { %v290_v57 = vrot.slane %v831_v36, %v856_v49 }
 0x175   :  { %v833_v37 = vpop.xlane.xlu1 %228 }
 0x176   :  { %v301_v52 = vrot.slane %v833_v37, %v856_v49 }
 0x177   :  { %v835_v38 = vpop.xlane.xlu0 %225 }
 0x178   :  { %v295_v53 = vrot.slane %v835_v38, %v851_v47 }
 0x179   :  { %v837_v39 = vpop.xlane.xlu1 %231 }
 0x17a   :  { %v305_v50 = vrot.slane %v837_v39, %v851_v47  ;;  %v297_v62 = vsel %vm296_vm3, %v295_v53, %v290_v57 }
 0x17b   :  { %v839_v40 = vpop.xlane.xlu0 %234 }
 0x17c   :  { %v310_v55 = vrot.slane %v839_v40, %v856_v49  ;;  %v306_v58 = vsel %vm296_vm3, %v305_v50, %v301_v52 }
 0x17d   :  { %v841_v41 = vpop.xlane.xlu1 %237  ;;  %v362_v1 = vsel %vm361_vm4, %v306_v58, %v297_v62 }
 0x17e   :  { %v314_v6 = vrot.slane %v841_v41, %v851_v47 }
 0x17f   :  { %v844_v43 = vpop.xlane.xlu0 %246 }
 0x180   :  { %v315_v60 = vsel %vm296_vm3, %v314_v6, %v310_v55  ;;  %v328_v9 = vrot.slane %v844_v43, %v856_v49  ;;  %v391_v6 = vsub.s32 2, %v760_v8 }
 0x181   :  { %v846_v45 = vpop.xlane.xlu1 %249  ;;  %v364_v4 = vsel %vm363_vm5, %v315_v60, %v362_v1 }
 0x182   :  { %v332_v2 = vrot.slane %v846_v45, %v851_v47 }
 0x183   :  { %v848_v46 = vpop.xlane.xlu0 %240 }
 0x184   :  { %v319_v59 = vrot.slane %v848_v46, %v856_v49  ;;  %v333_v16 = vsel %vm296_vm3, %v332_v2, %v328_v9 }
 0x185   :  { %v853_v48 = vpop.xlane.xlu1 %243 }
 0x186   :  { %v323_v54 = vrot.slane %v853_v48, %v851_v47 }
 0x187   :  { %v862_v51 = vpop.xlane.xlu0 %252 }
 0x188   :  { %v324_v63 = vsel %vm296_vm3, %v323_v54, %v319_v59  ;;  %v337_v5 = vrot.slane %v862_v51, %v856_v49 }
 0x189   :  { %v872_v56 = vpop.xlane.xlu1 %255  ;;  %v366_v11 = vsel %vm365_vm6, %v324_v63, %v364_v4 }
 0x18a   :  { %v341_v0 = vrot.slane %v872_v56, %v851_v47  ;;  %v368_v21 = vsel %vm367_vm7, %v333_v16, %v366_v11 }
 0x18b   :  { %v880_v61 = vpop.xlane.xlu0 %258 }
 0x18c   :  { %v346_v12 = vrot.slane %v880_v61, %v856_v49  ;;  %v342_v14 = vsel %vm296_vm3, %v341_v0, %v337_v5  ;;  %v395_v0 = vsub.s32 3, %v760_v8 }
 0x18d   :  { %v889_v3 = vpop.xlane.xlu1 %261  ;;  %v370_v22 = vsel %vm369_vm8, %v342_v14, %v368_v21 }
 0x18e   :  { %v350_v7 = vrot.slane %v889_v3, %v851_v47 }
 0x18f   :  { %v901_v13 = vpop.xlane.xlu0 %264 }
 0x190   :  { %v351_v18 = vsel %vm296_vm3, %v350_v7, %v346_v12  ;;  %v355_v19 = vrot.slane %v901_v13, %v856_v49  ;;  %v399_v12 = vsub.s32 4, %v760_v8 }
 0x191   :  { %v905_v17 = vpop.xlane.xlu1 %267  ;;  %v372_v24 = vsel %vm371_vm9, %v351_v18, %v370_v22 }
 0x192   :  { %v359_v20 = vrot.slane %v905_v17, %v851_v47 }
 0x194   :  { %v360_v23 = vsel %vm296_vm3, %v359_v20, %v355_v19 }
 0x195   :  { %v374_v25 = vsel %vm373_vm11, %v360_v23, %v372_v24 }
 0x196   :  { %v377_v26 = vsel %vm376_vm10, %v374_v25, -inf }
 0x197   :  { %378 = vmax.xlane.f32.xlu0 %v377_v26 }
 0x224   :  { %v921_v31 = vpop.xlane.xlu0 %378 }
 0x225   :  { %v384_v32 = vrot.slane %v921_v31, %v772_v15  ;;  %v388_v33 = vrot.slane %v921_v31, %v387_v28  ;;  %v927_v34 = vrot.slane %v921_v31, %v403_v29  ;;  %v931_v42 = vrot.slane %v921_v31, %v407_v30 }
 0x226   :  { %v940_v55 = vrot.slane %v921_v31, %v411_v35  ;;  %v396_v5 = vrot.slane %v921_v31, %v395_v0  ;;  %v400_v20 = vrot.slane %v921_v31, %v399_v12 }
 0x227   :  { %v422_v44 = vsub.f32 %v835_v38, %v384_v32  ;;  %v421_v50 = vsub.f32 %v831_v36, %v384_v32  ;;  %v431_v52 = vsub.f32 %v862_v51, %v927_v34  ;;  %v423_v15 = vsub.f32 %v833_v37, %v388_v33 }
 0x228   :  { %v433_v58 = vsub.f32 %v880_v61, %v931_v42  ;;  %v392_v38 = vrot.slane %v921_v31, %v391_v6  ;;  %v424_v60 = vsub.f32 %v837_v39, %v388_v33  ;;  %v435_v63 = vsub.f32 %v901_v13, %v940_v55 }
 0x229   :  { %v439_v53 = vmul.f32 1.442695, %v422_v44  ;;  %v437_v54 = vmul.f32 1.442695, %v421_v50  ;;  %v457_v57 = vmul.f32 1.442695, %v431_v52  ;;  %v427_v16 = vsub.f32 %v848_v46, %v396_v5 }
 0x22a   :  { %v441_v59 = vmul.f32 1.442695, %v423_v15  ;;  %v461_v62 = vmul.f32 1.442695, %v433_v58  ;;  %v443_v1 = vmul.f32 1.442695, %v424_v60  ;;  %v425_v2 = vsub.f32 %v839_v40, %v392_v38 }
 0x22b   :  { %681 = vpow2.f32 %v439_v53  ;;  %v465_v4 = vmul.f32 1.442695, %v435_v63  ;;  %v426_v9 = vsub.f32 %v841_v41, %v392_v38  ;;  %v449_v21 = vmul.f32 1.442695, %v427_v16 }
 0x22c   :  { %683 = vpow2.f32 %v437_v54  ;;  %v445_v7 = vmul.f32 1.442695, %v425_v2  ;;  %v428_v41 = vsub.f32 %v853_v48, %v396_v5  ;;  %v429_v24 = vsub.f32 %v844_v43, %v400_v20 }
 0x22d   :  { %685 = vpow2.f32 %v457_v57  ;;  %v447_v14 = vmul.f32 1.442695, %v426_v9  ;;  %v430_v28 = vsub.f32 %v846_v45, %v400_v20  ;;  %v432_v30 = vsub.f32 %v872_v56, %v927_v34 }
 0x22e   :  { %687 = vpow2.f32 %v441_v59  ;;  %v451_v8 = vmul.f32 1.442695, %v428_v41  ;;  %v453_v27 = vmul.f32 1.442695, %v429_v24  ;;  %v434_v35 = vsub.f32 %v889_v3, %v931_v42  ;;  %v661_v3 = vld [vmem:[%s1026_s2] ss:$0 sm:$0xff] }
 0x22f   :  { %689 = vpow2.f32 %v461_v62  ;;  %v455_v48 = vmul.f32 1.442695, %v430_v28  ;;  %v459_v33 = vmul.f32 1.442695, %v432_v30  ;;  %v436_v45 = vsub.f32 %v905_v17, %v940_v55 }
 0x230   :  { %691 = vpow2.f32 %v443_v1  ;;  %v463_v50 = vmul.f32 1.442695, %v434_v35  ;;  %v642_v42 = vmul.f32 %v661_v3, %v763_v10  ;;  %v621_v3 = vrot.slane %v839_v40, 6 }
 0x231   :  { %693 = vpow2.f32 %v465_v4  ;;  %v467_v52 = vmul.f32 1.442695, %v436_v45  ;;  %v631_v40 = vrot.slane %v901_v13, 1 }
 0x232   :  { %695 = vpow2.f32 %v445_v7  ;;  %v643_v17 = vsel %vm38_vm1, %v642_v42, 0.0 }
 0x233   :  { %697 = vpow2.f32 %v447_v14 }
 0x234   :  { %699 = vpow2.f32 %v449_v21 }
 0x235   :  { %v682_v39 = vpop.eup %681  ;;  %701 = vpow2.f32 %v451_v8 }
 0x236   :  { %v684_v11 = vpop.eup %683  ;;  %489 = vperm.xlu0 %678, %v682_v39   ;;  %703 = vpow2.f32 %v453_v27 }
 0x237   :  { %486 = vperm.xlu1 %677, %v684_v11   ;;  %v686_v18 = vpop.eup %685  ;;  %705 = vpow2.f32 %v455_v48 }
 0x238   :  { %v688_v19 = vpop.eup %687  ;;  %707 = vpow2.f32 %v459_v33 }
 0x239   :  { %v690_v22 = vpop.eup %689  ;;  %709 = vpow2.f32 %v463_v50 }
 0x23a   :  { %516 = vperm.xlu0 %678, %v686_v18   ;;  %v692_v23 = vpop.eup %691  ;;  %711 = vpow2.f32 %v467_v52 }
 0x23b   :  { %492 = vperm.xlu1 %677, %v688_v19   ;;  %v694_v25 = vpop.eup %693 }
 0x23c   :  { %v696_v26 = vpop.eup %695 }
 0x23d   :  { %v698_v29 = vpop.eup %697 }
 0x23e   :  { %522 = vperm.xlu0 %678, %v690_v22   ;;  %v700_v32 = vpop.eup %699 }
 0x23f   :  { %495 = vperm.xlu1 %677, %v692_v23   ;;  %v702_v44 = vpop.eup %701 }
 0x240   :  { %v704_v6 = vpop.eup %703 }
 0x241   :  { %v706_v15 = vpop.eup %705 }
 0x242   :  { %528 = vperm.xlu0 %678, %v694_v25   ;;  %v708_v56 = vpop.eup %707 }
 0x243   :  { %498 = vperm.xlu1 %677, %v696_v26   ;;  %v710_v34 = vpop.eup %709 }
 0x244   :  { %v712_v53 = vpop.eup %711 }
 0x247   :  { %501 = vperm.xlu1 %677, %v698_v29  }
 0x24b   :  { %504 = vperm.xlu1 %677, %v700_v32  }
 0x24f   :  { %507 = vperm.xlu1 %677, %v702_v44  }
 0x253   :  { %510 = vperm.xlu1 %677, %v704_v6  }
 0x257   :  { %513 = vperm.xlu1 %677, %v706_v15  }
 0x25b   :  { %519 = vperm.xlu1 %677, %v708_v56  }
 0x25f   :  { %525 = vperm.xlu1 %677, %v710_v34  }
 0x263   :  { %531 = vperm.xlu1 %677, %v712_v53  }
 0x287   :  { %644 = vadd.xlane.f32.xlu1 %v643_v17  ;;  %v623_v17 = vrot.slane %v848_v46, 5 }
 0x2b5   :  { %v490_v60 = vpop.permute.xlu0 %489 }
 0x2b6   :  { %v487_v54 = vpop.permute.xlu1 %486  ;;  %v540_v7 = vrot.slane %v490_v60, %v851_v47  ;;  %v629_v60 = vrot.slane %v880_v61, 2 }
 0x2b7   :  { %v536_v9 = vrot.slane %v487_v54, %v856_v49 }
 0x2b9   :  { %v517_v0 = vpop.permute.xlu0 %516  ;;  %v541_v22 = vsel %vm296_vm3, %v540_v7, %v536_v9 }
 0x2ba   :  { %v493_v55 = vpop.permute.xlu1 %492  ;;  %v581_v23 = vrot.slane %v517_v0, %v856_v49 }
 0x2bb   :  { %v545_v39 = vrot.slane %v493_v55, %v856_v49 }
 0x2bd   :  { %v523_v4 = vpop.permute.xlu0 %522 }
 0x2be   :  { %v496_v57 = vpop.permute.xlu1 %495  ;;  %v590_v25 = vrot.slane %v523_v4, %v856_v49 }
 0x2bf   :  { %v549_v2 = vrot.slane %v496_v57, %v851_v47 }
 0x2c1   :  { %v550_v16 = vsel %vm296_vm3, %v549_v2, %v545_v39  ;;  %v529_v27 = vpop.permute.xlu0 %528 }
 0x2c2   :  { %v499_v58 = vpop.permute.xlu1 %498  ;;  %v605_v26 = vsel %vm361_vm4, %v550_v16, %v541_v22  ;;  %v599_v35 = vrot.slane %v529_v27, %v856_v49 }
 0x2c3   :  { %v554_v12 = vrot.slane %v499_v58, %v856_v49 }
 0x2c6   :  { %v502_v38 = vpop.permute.xlu1 %501 }
 0x2c7   :  { %v558_v5 = vrot.slane %v502_v38, %v851_v47  ;;  %v627_v38 = vrot.slane %v862_v51, 3 }
 0x2c9   :  { %v559_v20 = vsel %vm296_vm3, %v558_v5, %v554_v12 }
 0x2ca   :  { %v505_v59 = vpop.permute.xlu1 %504  ;;  %v606_v29 = vsel %vm363_vm5, %v559_v20, %v605_v26 }
 0x2cb   :  { %v563_v18 = vrot.slane %v505_v59, %v856_v49  ;;  %v625_v59 = vrot.slane %v844_v43, 4 }
 0x2ce   :  { %v508_v62 = vpop.permute.xlu1 %507 }
 0x2cf   :  { %v567_v11 = vrot.slane %v508_v62, %v851_v47 }
 0x2d1   :  { %v568_v8 = vsel %vm296_vm3, %v567_v11, %v563_v18 }
 0x2d2   :  { %v511_v63 = vpop.permute.xlu1 %510  ;;  %v607_v30 = vsel %vm365_vm6, %v568_v8, %v606_v29 }
 0x2d3   :  { %v572_v21 = vrot.slane %v511_v63, %v856_v49  ;;  %v646_v49 = vld [vmem:[%s1027_s4] sm:$0xff] }
 0x2d6   :  { %v514_v1 = vpop.permute.xlu1 %513 }
 0x2d7   :  { %v576_v14 = vrot.slane %v514_v1, %v851_v47 }
 0x2d9   :  { %v577_v28 = vsel %vm296_vm3, %v576_v14, %v572_v21 }
 0x2da   :  { %v520_v10 = vpop.permute.xlu1 %519  ;;  %v608_v44 = vsel %vm367_vm7, %v577_v28, %v607_v30 }
 0x2db   :  { %v585_v19 = vrot.slane %v520_v10, %v851_v47 }
 0x2dd   :  { %v586_v48 = vsel %vm296_vm3, %v585_v19, %v581_v23 }
 0x2de   :  { %v526_v41 = vpop.permute.xlu1 %525  ;;  %v609_v45 = vsel %vm369_vm8, %v586_v48, %v608_v44 }
 0x2df   :  { %v594_v24 = vrot.slane %v526_v41, %v851_v47 }
 0x2e1   :  { %v595_v32 = vsel %vm296_vm3, %v594_v24, %v590_v25 }
 0x2e2   :  { %v532_v33 = vpop.permute.xlu1 %531  ;;  %v610_v52 = vsel %vm371_vm9, %v595_v32, %v609_v45 }
 0x2e3   :  { %v603_v50 = vrot.slane %v532_v33, %v851_v47  ;;  %v619_v47 = vrot.slane %v833_v37, 7 }
 0x2e5   :  { %v604_v6 = vsel %vm296_vm3, %v603_v50, %v599_v35  ;;  %v620_v54 = vsel %vm361_vm4, %v619_v47, %v831_v36 }
 0x2e6   :  { %v611_v15 = vsel %vm373_vm11, %v604_v6, %v610_v52  ;;  %v622_v55 = vsel %vm363_vm5, %v621_v3, %v620_v54 }
 0x2e7   :  { %v613_v56 = vsel %vm376_vm10, %v611_v15, 0.0  ;;  %v624_v58 = vsel %vm365_vm6, %v623_v17, %v622_v55 }
 0x2e8   :  { %614 = vadd.xlane.f32.xlu0 %v613_v56  ;;  %v626_v62 = vsel %vm367_vm7, %v625_v59, %v624_v58 }
 0x2e9   :  { %v628_v36 = vsel %vm369_vm8, %v627_v38, %v626_v62 }
 0x2ea   :  { %v630_v0 = vsel %vm371_vm9, %v629_v60, %v628_v36 }
 0x2eb   :  { %v632_v2 = vsel %vm373_vm11, %v631_v40, %v630_v0 }
 0x314   :  { %v645_v53 = vpop.xlane.xlu1 %644 }
 0x315   :  { %v647_v42 = vsub.f32 %v645_v53, %v646_v49 }
 0x317   :  { %v648_v57 = vmul.f32 0.00023148148, %v647_v42 }
 0x319   :  { %v649_v46 = vmul.f32 %v648_v57, %v648_v57 }
 0x31b   :  { %v650_v51 = vmul.f32 0.2, %v649_v46 }
 0x375   :  { %v615_v34 = vpop.xlane.xlu0 %614 }
 0x376   :  { %713 = vlog2.f32 %v615_v34 }
 0x380   :  { %v714_v37 = vpop.eup %713 }
 0x381   :  { %v617_v63 = vmul.f32 0.6931472, %v714_v37 }
 0x383   :  { %v618_v1 = vadd.f32 %v617_v63, %v921_v31 }
 0x385   :  { %v634_v4 = vsub.f32 %v618_v1, %v632_v2 }
 0x387   :  { %v651_v43 = vadd.f32 %v650_v51, %v634_v4 }
 0x389   :  { %653 = vst.msk [vmem:[%s1028_s5] sm:$0xff] %vm652_vm12, %v651_v43 }

</bundles_post_ra>
